<compile_context>
chip_gen: v6e
topology: v6e:2x2x1
jax: 0.10.0
libtpu: 0.0.40
codegen_flags: <defaults>
</compile_context>

<pallas_src>
import functools

import jax
import jax.numpy as jnp
from jax.experimental import pallas as pl
from jax.experimental.pallas import tpu as pltpu


def _round_up(x, m):
    return ((x + m - 1) // m) * m


def _cdiv(a, b):
    return (a + b - 1) // b


# ----------------------------------------------------------------------------
# Parameter initialization (deterministic, mirrors the PyTorch module shapes)
# ----------------------------------------------------------------------------
def _orthogonal(key, shape, gain):
    """Mimic torch.nn.init.orthogonal_ semantics (shape = (out, in))."""
    rows, cols = shape
    transpose = rows < cols
    a = jax.random.normal(key, (max(rows, cols), min(rows, cols)), dtype=jnp.float32)
    q, r = jnp.linalg.qr(a)
    d = jnp.sign(jnp.diag(r))
    d = jnp.where(d == 0, 1.0, d)  # avoid zeroing a column if R has a 0 diagonal
    q = q * d[None, :]
    if transpose:
        q = q.T
    q = q[:rows, :cols]
    return gain * q


def _kaiming_uniform_linear(key, out_dim, in_dim):
    """Default torch.nn.Linear init: U(-1/sqrt(in), 1/sqrt(in)) for W and b."""
    kw, kb = jax.random.split(key)
    bound = 1.0 / jnp.sqrt(jnp.float32(in_dim))
    w = jax.random.uniform(kw, (out_dim, in_dim), jnp.float32, -bound, bound)
    b = jax.random.uniform(kb, (out_dim,), jnp.float32, -bound, bound)
    return w, b


def init_qnet_params(key, state_dim, dims, action_dim):
    """Returns list of (W, b) with W shaped (out, in), like torch Linear."""
    layer_dims = [state_dim, *dims, action_dim]
    n_layers = len(layer_dims) - 1
    keys = jax.random.split(key, n_layers)
    params = []
    for i in range(n_layers):
        in_d, out_d = layer_dims[i], layer_dims[i + 1]
        params.append(_kaiming_uniform_linear(keys[i], out_d, in_d))
    # layer_init_with_orthogonal(self.net[-1], std=0.1)
    in_d, out_d = layer_dims[-2], layer_dims[-1]
    w_last = _orthogonal(keys[-1], (out_d, in_d), gain=0.1)
    b_last = jnp.full((out_d,), 1e-06, dtype=jnp.float32)
    params[-1] = (w_last, b_last)
    return params


# ----------------------------------------------------------------------------
# One-time parameter preparation (hoisted out of the per-call hot path)
# ----------------------------------------------------------------------------
def prepare_qnet_params(params):
    """Pack the whole MLP into ONE lane-padded f32 slab (single DMA operand).

    slab[l, :in_d, :out_d]     = W_l.T   (so y = x @ slab_l + b_l)
    slab[l, in_rows-1, :out_d] = b_l     (bias parked on the last sublane row)

    Returns (slab, layer_dims) where layer_dims = ((in_d, out_d), ...) is a
    hashable static description used by the kernel for exact slicing.
    """
    layer_dims = tuple((int(w.shape[1]), int(w.shape[0])) for w, _ in params)
    max_in = max(d[0] for d in layer_dims)
    max_out = max(d[1] for d in layer_dims)
    in_rows = _round_up(max_in + 1, 8)   # +1 sublane row to hold the bias
    out_cols = _round_up(max_out, 128)   # lane-pad
    slab = jnp.zeros((len(params), in_rows, out_cols), jnp.float32)
    for l, (w, b) in enumerate(params):
        in_d, out_d = layer_dims[l]
        slab = slab.at[l, :in_d, :out_d].set(jnp.asarray(w, jnp.float32).T)
        slab = slab.at[l, in_rows - 1, :out_d].set(jnp.asarray(b, jnp.float32))
    return slab, layer_dims


# ----------------------------------------------------------------------------
# Pallas kernel: fused MLP forward (matmul + bias + ReLU chain, raw last layer)
# ----------------------------------------------------------------------------
def _qnet_mlp_kernel(layer_dims, in_rows, x_ref, slab_ref, out_ref):
    n_layers = len(layer_dims)
    h = x_ref[...]
    for l, (in_d, out_d) in enumerate(layer_dims):
        w = slab_ref[l, :in_d, :out_d]                      # static slice of the slab
        b = slab_ref[l, in_rows - 1:in_rows, :out_d]        # (1, out_d) bias row
        h = jnp.dot(h, w, preferred_element_type=jnp.float32) + b
        if l < n_layers - 1:  # if_raw_out=True -> no activation on the last layer
            h = jnp.maximum(h, 0.0)
    out_ref[...] = h.astype(out_ref.dtype)


# ----------------------------------------------------------------------------
# Wrapper
# ----------------------------------------------------------------------------
def qnet_forward(state, slab, layer_dims, *, tile_cap=1024):
    """state: [batch, state_dim] f32; slab: [L, in_rows, 128] packed params."""
    state = jnp.asarray(state, jnp.float32)
    batch, state_dim = state.shape
    action_dim = layer_dims[-1][1]
    in_rows = slab.shape[1]

    # Adaptive batch tiling:
    #  * choose the number of blocks first, then the tile, so padding < 8 rows/block
    #  * single big tile (up to tile_cap rows) whenever possible -> fewest grid steps
    #  * keep the block count even when splitting, so v7x's 2 TCs get balanced work
    n_blocks = max(1, _cdiv(batch, tile_cap))
    if n_blocks > 1 and n_blocks % 2:
        n_blocks += 1
    tb = _round_up(_cdiv(batch, n_blocks), 8)
    padded_batch = tb * n_blocks
    if padded_batch != batch:
        state = jnp.pad(state, ((0, padded_batch - batch), (0, 0)))

    out = pl.pallas_call(
        functools.partial(_qnet_mlp_kernel, layer_dims, in_rows),
        out_shape=jax.ShapeDtypeStruct((padded_batch, action_dim), jnp.float32),
        grid=(n_blocks,),
        in_specs=[
            # Activations: the only pipelined operand.
            pl.BlockSpec((tb, state_dim), lambda i: (i, 0)),
            # Whole parameter slab, constant index_map -> one DMA, VMEM-resident.
            pl.BlockSpec(slab.shape, lambda i: (0, 0, 0)),
        ],
        out_specs=pl.BlockSpec((tb, action_dim), lambda i: (i, 0)),
        compiler_params=pltpu.CompilerParams(
            dimension_semantics=("parallel",),  # shards batch grid over v7x's 2 TCs
        ),
    )(state, slab)

    if padded_batch != batch:
        out = out[:batch]
    return out


# ----------------------------------------------------------------------------
# Pure-JAX reference for correctness check
# ----------------------------------------------------------------------------
def qnet_forward_ref(state, params):
    h = state
    for i, (w, b) in enumerate(params):
        h = h @ w.T + b
        if i < len(params) - 1:
            h = jnp.maximum(h, 0.0)
    return h


if __name__ == "__main__":
    key = jax.random.PRNGKey(0)
    k_params, k_state = jax.random.split(key)

    batch = 2
    state_dim = 16
    dims = (32, 32)      # hidden dims of the MLP
    action_dim = 8

    params = init_qnet_params(k_params, state_dim, dims, action_dim)
    state = jax.random.normal(k_state, (batch, state_dim), dtype=jnp.float32)

    # Hoisted once: transpose + single-slab packing happen here, not per call.
    slab, layer_dims = prepare_qnet_params(params)

    fwd = jax.jit(qnet_forward, static_argnames=("layer_dims", "tile_cap"))
    out = jax.block_until_ready(fwd(state, slab, layer_dims))

    ref = qnet_forward_ref(state, params)
    assert out.shape == (batch, action_dim)
    assert jnp.allclose(out, ref, atol=1e-5, rtol=1e-5), (out, ref)

    # batch=300: now a single grid step with 4 padded rows (was 2 steps, 212 pad rows).
    big_state = jax.random.normal(jax.random.PRNGKey(1), (300, state_dim), jnp.float32)
    big_out = jax.block_until_ready(fwd(big_state, slab, layer_dims))
    big_ref = qnet_forward_ref(big_state, params)
    assert big_out.shape == (300, action_dim)
    assert jnp.allclose(big_out, big_ref, atol=1e-4, rtol=1e-4)

    # batch=2500: exercises the multi-block path (4 balanced blocks of 632 rows).
    huge_state = jax.random.normal(jax.random.PRNGKey(2), (2500, state_dim), jnp.float32)
    huge_out = jax.block_until_ready(fwd(huge_state, slab, layer_dims))
    huge_ref = qnet_forward_ref(huge_state, params)
    assert huge_out.shape == (2500, action_dim)
    assert jnp.allclose(huge_out, huge_ref, atol=1e-4, rtol=1e-4)

    # TODO(synk): QNet.get_action's epsilon-greedy branch (torch.rand/randint) is
    # host-side control flow, not part of the forward pass, so it is not kernelized.

    print("KERNEL_OK")
</pallas_src>

<mosaic_0001>
module attributes {stable_mosaic.version = 11 : i64} {
  func.func @_qnet_mlp_kernel(%arg0: i32, %arg1: memref<8x16xf32, #tpu.memory_space<vmem>>, %arg2: memref<3x40x128xf32, #tpu.memory_space<vmem>>, %arg3: memref<8x8xf32, #tpu.memory_space<vmem>>) attributes {dimension_semantics = [#tpu.dimension_semantics<parallel>], iteration_bounds = array<i64: 1>, scalar_prefetch = 0 : i64, scratch_operands = 0 : i64, tpu.core_type = #tpu.core_type<tc>, window_params = [{transform_indices = @transform_0, window_bounds = array<i64: 8, 16>}, {pipeline_mode = #tpu.pipeline_mode<synchronous>, transform_indices = @transform_1, window_bounds = array<i64: 3, 40, 128>}, {transform_indices = @transform_2, window_bounds = array<i64: 8, 8>}]} {
    %c0 = arith.constant 0 : index
    %c0_0 = arith.constant 0 : index
    %0 = vector.load %arg1[%c0, %c0_0] : memref<8x16xf32, #tpu.memory_space<vmem>>, vector<8x16xf32>
    %c0_1 = arith.constant 0 : index
    %c0_2 = arith.constant 0 : index
    %c0_3 = arith.constant 0 : index
    %1 = vector.load %arg2[%c0_1, %c0_2, %c0_3] : memref<3x40x128xf32, #tpu.memory_space<vmem>>, vector<1x16x32xf32>
    %2 = vector.shape_cast %1 : vector<1x16x32xf32> to vector<16x32xf32>
    %c0_4 = arith.constant 0 : index
    %c39 = arith.constant 39 : index
    %c0_5 = arith.constant 0 : index
    %3 = vector.load %arg2[%c0_4, %c39, %c0_5] : memref<3x40x128xf32, #tpu.memory_space<vmem>>, vector<1x1x32xf32>
    %4 = vector.shape_cast %3 : vector<1x1x32xf32> to vector<1x32xf32>
    %cst = arith.constant dense<0.000000e+00> : vector<8x32xf32>
    %5 = tpu.matmul %0, %2, %cst {dimension_numbers = #tpu.dot_dimension_numbers<[1], [0], [0], [1], [0, 0, 1, 1], [], []>} : vector<8x16xf32>, vector<16x32xf32>, vector<8x32xf32> -> vector<8x32xf32>
    %6 = vector.broadcast %4 : vector<1x32xf32> to vector<8x32xf32>
    %7 = arith.addf %5, %6 : vector<8x32xf32>
    %cst_6 = arith.constant 0.000000e+00 : f32
    %8 = vector.broadcast %cst_6 : f32 to vector<8x32xf32>
    %9 = arith.maximumf %7, %8 : vector<8x32xf32>
    %c1 = arith.constant 1 : index
    %c0_7 = arith.constant 0 : index
    %c0_8 = arith.constant 0 : index
    %10 = vector.load %arg2[%c1, %c0_7, %c0_8] : memref<3x40x128xf32, #tpu.memory_space<vmem>>, vector<1x32x32xf32>
    %11 = vector.shape_cast %10 : vector<1x32x32xf32> to vector<32x32xf32>
    %c1_9 = arith.constant 1 : index
    %c39_10 = arith.constant 39 : index
    %c0_11 = arith.constant 0 : index
    %12 = vector.load %arg2[%c1_9, %c39_10, %c0_11] : memref<3x40x128xf32, #tpu.memory_space<vmem>>, vector<1x1x32xf32>
    %13 = vector.shape_cast %12 : vector<1x1x32xf32> to vector<1x32xf32>
    %cst_12 = arith.constant dense<0.000000e+00> : vector<8x32xf32>
    %14 = tpu.matmul %9, %11, %cst_12 {dimension_numbers = #tpu.dot_dimension_numbers<[1], [0], [0], [1], [0, 0, 1, 1], [], []>} : vector<8x32xf32>, vector<32x32xf32>, vector<8x32xf32> -> vector<8x32xf32>
    %15 = vector.broadcast %13 : vector<1x32xf32> to vector<8x32xf32>
    %16 = arith.addf %14, %15 : vector<8x32xf32>
    %cst_13 = arith.constant 0.000000e+00 : f32
    %17 = vector.broadcast %cst_13 : f32 to vector<8x32xf32>
    %18 = arith.maximumf %16, %17 : vector<8x32xf32>
    %c2 = arith.constant 2 : index
    %c0_14 = arith.constant 0 : index
    %c0_15 = arith.constant 0 : index
    %19 = vector.load %arg2[%c2, %c0_14, %c0_15] : memref<3x40x128xf32, #tpu.memory_space<vmem>>, vector<1x32x8xf32>
    %20 = vector.shape_cast %19 : vector<1x32x8xf32> to vector<32x8xf32>
    %c2_16 = arith.constant 2 : index
    %c39_17 = arith.constant 39 : index
    %c0_18 = arith.constant 0 : index
    %21 = vector.load %arg2[%c2_16, %c39_17, %c0_18] : memref<3x40x128xf32, #tpu.memory_space<vmem>>, vector<1x1x8xf32>
    %22 = vector.shape_cast %21 : vector<1x1x8xf32> to vector<1x8xf32>
    %cst_19 = arith.constant dense<0.000000e+00> : vector<8x8xf32>
    %23 = tpu.matmul %18, %20, %cst_19 {dimension_numbers = #tpu.dot_dimension_numbers<[1], [0], [0], [1], [0, 0, 1, 1], [], []>} : vector<8x32xf32>, vector<32x8xf32>, vector<8x8xf32> -> vector<8x8xf32>
    %24 = vector.broadcast %22 : vector<1x8xf32> to vector<8x8xf32>
    %25 = arith.addf %23, %24 : vector<8x8xf32>
    %c0_20 = arith.constant 0 : index
    %c0_21 = arith.constant 0 : index
    %26 = vector.load %arg3[%c0_20, %c0_21] : memref<8x8xf32, #tpu.memory_space<vmem>>, vector<8x8xf32>
    tpu.vector_store %arg3[%c0_20, %c0_21], %25 {strides = array<i32>} : memref<8x8xf32, #tpu.memory_space<vmem>>, vector<8x8xf32>,
    return
  }
  func.func @transform_0(%arg0: i32) -> (i32, i32) {
    %c0_i32 = arith.constant 0 : i32
    %c0_i32_0 = arith.constant 0 : i32
    return %arg0, %c0_i32 : i32, i32
  }
  func.func @transform_1(%arg0: i32) -> (i32, i32, i32) {
    %c0_i32 = arith.constant 0 : i32
    %c0_i32_0 = arith.constant 0 : i32
    %c0_i32_1 = arith.constant 0 : i32
    %c0_i32_2 = arith.constant 0 : i32
    return %c0_i32, %c0_i32_0, %c0_i32_1 : i32, i32, i32
  }
  func.func @transform_2(%arg0: i32) -> (i32, i32) {
    %c0_i32 = arith.constant 0 : i32
    %c0_i32_0 = arith.constant 0 : i32
    return %arg0, %c0_i32 : i32, i32
  }
}

</mosaic_0001>

<bundles_post_ra>
// kernel: qnet_forward.1
= control target key start
LH: loop header
LB: loop body
LE: loop exit
PB: predicated region body
PF: predicated region fallthrough
CT: control target
= control target key end

     0   :  { %7 = vsyncpa [#allocation3], 0  ;;  %s358_s9 = smov [#allocation2]   ;;  %s392_s0 = inlined_call_operand.vmem [shape: f32[8,16], index: 0, kind: input, shape index: {}]   ;;  %s393_s1 = inlined_call_operand.hbm [shape: f32[3,40,128], index: 1, kind: input, shape index: {}]   ;;  %s394_s2 = inlined_call_operand.vmem [shape: f32[8,8], index: 2, kind: output, shape index: {}]  }
   0x1   :  { %s15_s10 = sshll.u32 %s358_s9, 4  ;;  %s16_s10 = int_to_ptr.vmem [resolvable:$true] %s15_s10 }
   0x2   :  { %s344_s11 = scalar_lea.vmem %s16_s10, 1920  ;;  %p349_p1 = scmp.lt.s32.totalorder %s16_s10, %s16_s10 }
   0x3   :  { %p345_p0 = scmp.ne.s32.totalorder %s16_s10, %s344_s11  ;;  %p350_p2 = scmp.lt.s32.totalorder %s344_s11, %s344_s11 }
   0x5   :  { %p351_p3 = por %p350_p2, %p349_p1 }
   0x7   :  { %p352_p4 = pnand %p351_p3, %p345_p0 }
   0x9   :  { %355 = shalt.err (!%p352_p4)
}
   0xa   :  { %s359_s12 = smov 128   ;;  %s360_s13 = smov 8  }
   0xb   :  { %21 = dma.hbm_to_vmem [thread:$0]  %s393_s1, 1920, %s16_s10, [#allocation3], %s359_s12, %s359_s12, %s360_s13  }
   0xc   :  { %356 = dma.done.wait [#allocation3], 1920  }
   0xd   :  { %357 = vsyncadd [#allocation3], 4294965376  ;;  %v361_v0 = vmov 0.0   ;;  %vm362_vm0 = vmmov 0   ;;  %v27_v1 = vld [vmem:[#allocation2 + $0x8] sm:$0xff]  ;;  %v26_v2 = vld [vmem:[#allocation2] sm:$0xff] }
   0xe   :  { %302 = vmatprep.subr.mxu0 %v361_v0  ;;  %306 = vmatprep.mubr.msk.f32.mxu0 %vm362_vm0, %v361_v0  ;;  %v25_v3 = vld [vmem:[%s392_s0] sm:$0xff]  ;;  %vm33_vm1 = vcmask 130048   ;;  %v111_v5 = vld [vmem:[#allocation2 + $0x38] sm:$0xff]  ;;  %v110_v6 = vld [vmem:[#allocation2 + $0x30] sm:$0xff]  ;;  %vm118_vm2 = vcmask 261120   ;;  %vm276_vm3 = vcmask 64512  }
   0xf   :  { %309 = vmatprep.subr.mxu1 %v361_v0  ;;  %317 = vmatprep.mubr.msk.f32.mxu1 %vm362_vm0, %v361_v0  ;;  %v112_v4 = vld [vmem:[#allocation2 + $0x40] sm:$0xff]  ;;  %v109_v7 = vld [vmem:[#allocation2 + $0x28] sm:$0xff]  ;;  %v195_v15 = vld [vmem:[#allocation2 + $0x58] sm:$0xff] }
  0x10   :  { %303 = vmatpush3.msra.mxu0 %v27_v1  ;;  %310 = vmatpush3.msra.mxu1 %v112_v4  ;;  %v197_v8 = vld [vmem:[#allocation2 + $0x68] sm:$0xff]  ;;  %v283_v9 = vld [vmem:[#allocation2 + $0x27] ss:$0 sm:$0xff]  ;;  %v194_v16 = vld [vmem:[#allocation2 + $0x50] sm:$0xff] }
  0x11   :  { %304 = vmatprep.subr.mxu0 %v361_v0  ;;  %311 = vmatprep.subr.mxu1 %v361_v0  ;;  %v196_v14 = vld [vmem:[#allocation2 + $0x60] sm:$0xff]  ;;  %v285_v17 = vld [vmem:[#allocation2 + $0x4f] ss:$0 sm:$0xff]  ;;  %v287_v22 = vld [vmem:[#allocation2 + $0x77] ss:$0 sm:$0xff] }
  0x12   :  { %305 = vmatpush3.msra.mxu0 %v26_v2  ;;  %312 = vmatpush3.msra.mxu1 %v111_v5 }
  0x13   :  { %307 = vmatmul.mubr.msk.f32.vlgmr.msra.gmra.mxu0 %vm33_vm1, %v25_v3  ;;  %320 = vmatprep.subr.mxu0 %v361_v0 }
  0x14   :  { %328 = vmatprep.mubr.msk.f32.mxu0 %vm362_vm0, %v361_v0  ;;  %313 = vmatprep.subr.mxu1 %v361_v0 }
  0x15   :  { %314 = vmatpush3.msra.mxu1 %v110_v6  ;;  %321 = vmatpush3.msra.mxu0 %v197_v8 }
  0x16   :  { %315 = vmatprep.subr.mxu1 %v361_v0  ;;  %322 = vmatprep.subr.mxu0 %v361_v0 }
  0x17   :  { %316 = vmatpush3.msra.mxu1 %v109_v7  ;;  %323 = vmatpush3.msra.mxu0 %v196_v14 }
  0x18   :  { %324 = vmatprep.subr.mxu0 %v361_v0 }
  0x19   :  { %325 = vmatpush3.msra.mxu0 %v195_v15 }
  0x1a   :  { %326 = vmatprep.subr.mxu0 %v361_v0 }
  0x1b   :  { %327 = vmatpush3.msra.mxu0 %v194_v16 }
  0xd3   :  { %v103_v10 = vpop.f32.mrf.mxu0 }
  0xd4   :  { %v104_v11 = vadd.f32 %v283_v9, %v103_v10 }
  0xd5   :  { %v308_v12 = vpop.f32.mrf.mxu0 }
  0xd6   :  { %v107_v13 = vmax.f32 %v104_v11, 0.0 }
  0xd8   :  { %318 = vmatmul.mubr.msk.f32.vlgmr.msra.gmra.mxu1 %vm118_vm2, %v107_v13 }
 0x198   :  { %v188_v18 = vpop.f32.mrf.mxu1 }
 0x199   :  { %v189_v19 = vadd.f32 %v285_v17, %v188_v18 }
 0x19a   :  { %v319_v20 = vpop.f32.mrf.mxu1 }
 0x19b   :  { %v192_v21 = vmax.f32 %v189_v19, 0.0 }
 0x19d   :  { %329 = vmatmul.mubr.msk.f32.vlgmr.msra.gmra.mxu0 %vm118_vm2, %v192_v21 }
 0x25d   :  { %v272_v23 = vpop.f32.mrf.mxu0 }
 0x25e   :  { %v273_v24 = vadd.f32 %v287_v22, %v272_v23 }
 0x25f   :  { %v330_v25 = vpop.f32.mrf.mxu0 }
 0x260   :  { %277 = vst.msk [vmem:[%s394_s2] sm:$0xff] %vm276_vm3, %v273_v24 }
 0x261   :  { %282 = vsyncpa [#allocation3], 1 }

</bundles_post_ra>
